<compile_context>
chip_gen: v7x
topology: tpu7x:2x2x1
jax: 0.10.0
libtpu: 0.0.40
codegen_flags: <defaults>
</compile_context>

<pallas_src>
import functools

import jax
import jax.numpy as jnp
from jax.experimental import pallas as pl
from jax.experimental.pallas import tpu as pltpu


def _accuracy_kernel(pred_ref, tgt_ref, out_ref, *, topk, n_total):
    """One row-tile of the accuracy count (writes a per-block partial count).

    pred_ref: (TN, C) float (native dtype), tgt_ref: (TN, 1) int32,
    out_ref:  (1, L) float32 partial counts for this block (L = len(topk)).
    """
    i = pl.program_id(0)

    pred = pred_ref[...]                                   # (TN, C) native dtype
    tgt = tgt_ref[...]                                     # (TN, 1) i32
    tn, c = pred.shape

    # Score of the target class per row: gather-free masked row-max.
    # Class iota is (1, C); broadcasting against tgt (TN, 1) avoids
    # materializing a full (TN, C) iota every grid step.
    col = jax.lax.broadcasted_iota(jnp.int32, (1, c), 1)   # (1, C)
    neg = jnp.array(jnp.finfo(pred.dtype).min, dtype=pred.dtype)
    target_score = jnp.max(jnp.where(col == tgt, pred, neg),
                           axis=1, keepdims=True)          # (TN, 1)

    # rank = #classes strictly greater than the target's score.
    # target in top-k  <=>  rank < k  (matches torch.topk for distinct scores).
    # Reduction done on the (otherwise idle) MXU: (TN,C) @ (C,1) ones-vector.
    mask_gt = (pred > target_score).astype(jnp.float32)    # (TN, C)
    ones_col = jnp.ones((c, 1), dtype=jnp.float32)         # (C, 1)
    rank = jnp.dot(mask_gt, ones_col,
                   preferred_element_type=jnp.float32)     # (TN, 1) exact ints

    # Row-validity mask only when the last tile is ragged (trace-time check).
    need_mask = (n_total % tn) != 0
    if need_mask:
        row = i * tn + jax.lax.broadcasted_iota(jnp.int32, (tn, 1), 0)
        valid = (row < n_total).astype(jnp.float32)        # (TN, 1)

    # topk values are compile-time Python ints; L is tiny (usually 1-3).
    partials = []
    for k in topk:
        hit_k = (rank < float(k)).astype(jnp.float32)      # (TN, 1)
        if need_mask:
            hit_k = hit_k * valid
        partials.append(jnp.sum(hit_k))                    # scalar f32
    out_ref[...] = jnp.stack(partials).reshape(1, len(topk))


def _pick_block_rows(n, c, dtype):
    """Size the row tile by bytes: ~16 MiB of double-buffered streaming data
    (pred lane-padded to 128 lanes + 512 B/row lane-padded target stream),
    which fits comfortably under the 48 MiB vmem_limit we request and under
    v7x's 64 MiB physical VMEM."""
    itemsize = jnp.dtype(dtype).itemsize
    c_pad = ((c + 127) // 128) * 128               # lane-padded pred width
    # 2x for double buffering; (TN,1) i32 target block pads to 128 lanes.
    row_bytes = 2 * (c_pad * itemsize + 512)
    budget = 16 * 1024 * 1024
    tn = budget // max(row_bytes, 1)
    tn = max(8, (tn // 8) * 8)
    n_pad = ((n + 7) // 8) * 8
    return int(min(tn, n_pad))


def accuracy(pred, target, topk=1, block_rows=None):
    assert isinstance(topk, (int, tuple))
    if isinstance(topk, int):
        topk_t = (int(topk),)
        return_single = True
    else:
        topk_t = tuple(int(k) for k in topk)
        return_single = False

    n, c = pred.shape
    num_k = len(topk_t)
    tgt = target.astype(jnp.int32).reshape(n, 1)

    if block_rows is None:
        tn = _pick_block_rows(n, c, pred.dtype)
    else:
        tn = max(8, (int(block_rows) // 8) * 8)
    n_blocks = pl.cdiv(n, tn)

    # TODO(synk): for very large C (e.g. LM vocab >= 32k), add an inner class
    # grid axis with a two-pass (max, then rank) scheme; a (TN, C) block is
    # fine for classification-sized C.
    kernel = functools.partial(_accuracy_kernel, topk=topk_t, n_total=n)

    partial_counts = pl.pallas_call(
        kernel,
        out_shape=jax.ShapeDtypeStruct((n_blocks, num_k), jnp.float32),
        grid=(n_blocks,),
        in_specs=[
            pl.BlockSpec((tn, c), lambda i: (i, 0)),   # pred tile, native dtype
            pl.BlockSpec((tn, 1), lambda i: (i, 0)),   # target tile
        ],
        out_specs=pl.BlockSpec((1, num_k), lambda i: (i, 0)),  # per-block partial
        compiler_params=pltpu.CompilerParams(
            dimension_semantics=("parallel",),
            vmem_limit_bytes=48 * 1024 * 1024),
    )(pred, tgt)

    counts = jnp.sum(partial_counts, axis=0)   # (num_k,)
    if return_single:
        return counts.reshape(1)               # shape (1,)
    return [counts[j:j + 1] for j in range(num_k)]


class Accuracy:
    """JAX/Pallas port of the PyTorch Accuracy module."""

    def __init__(self, topk=(1,)):
        self.topk = topk

    def __call__(self, pred, target):
        return accuracy(pred, target, self.topk)

    forward = __call__


def _reference_accuracy(pred, target, topk):
    """Pure-JAX sort-based reference (mirrors torch.topk semantics)."""
    res = []
    order = jnp.argsort(-pred.astype(jnp.float32), axis=1)
    for k in topk:
        topk_idx = order[:, :k]
        correct = jnp.any(topk_idx == target[:, None], axis=1)
        res.append(jnp.sum(correct.astype(jnp.float32)).reshape(1))
    return res


if __name__ == "__main__":
    key = jax.random.PRNGKey(0)
    k_pred, k_tgt, k_tgt2, k_perm, k_pred3, k_tgt3 = jax.random.split(key, 6)

    # --- Test 1: f32 scores, multi-k, N not a multiple of 8 (boundary mask) ---
    N1, C = 13, 32
    pred_f32 = jax.random.normal(k_pred, (N1, C), dtype=jnp.float32)
    target1 = jax.random.randint(k_tgt, (N1,), 0, C, dtype=jnp.int32)

    module = Accuracy(topk=(1, 5))
    out = module(pred_f32, target1)
    out = [jax.block_until_ready(o) for o in out]
    ref = _reference_accuracy(pred_f32, target1, (1, 5))
    for got, want in zip(out, ref):
        assert got.shape == (1,), got.shape
        assert jnp.allclose(got, want), (got, want)

    # --- Test 2: bf16 scores streamed natively, topk as int ---
    N2 = 16
    vals = (jnp.arange(C, dtype=jnp.float32) / C).astype(jnp.bfloat16)  # distinct
    perm_keys = jax.random.split(k_perm, N2)
    pred_bf16 = jnp.stack([jax.random.permutation(kk, vals) for kk in perm_keys])
    target2 = jax.random.randint(k_tgt2, (N2,), 0, C, dtype=jnp.int32)

    out2 = jax.block_until_ready(accuracy(pred_bf16, target2, topk=1))
    ref2 = _reference_accuracy(pred_bf16, target2, (1,))[0]
    assert out2.shape == (1,), out2.shape
    assert jnp.allclose(out2, ref2), (out2, ref2)

    # --- Test 3: multi-block path (partial counts + wrapper sum, ragged tail) ---
    N3 = 40
    pred3 = jax.random.normal(k_pred3, (N3, C), dtype=jnp.float32)
    target3 = jax.random.randint(k_tgt3, (N3,), 0, C, dtype=jnp.int32)
    out3 = accuracy(pred3, target3, topk=(1, 3), block_rows=16)   # 3 blocks
    out3 = [jax.block_until_ready(o) for o in out3]
    ref3 = _reference_accuracy(pred3, target3, (1, 3))
    for got, want in zip(out3, ref3):
        assert got.shape == (1,), got.shape
        assert jnp.allclose(got, want), (got, want)

    print("KERNEL_OK")
</pallas_src>

<mosaic_0001>
module attributes {stable_mosaic.version = 11 : i64} {
  func.func @_accuracy_kernel(%arg0: i32, %arg1: memref<16x32xf32, #tpu.memory_space<vmem>>, %arg2: memref<16x1xi32, #tpu.memory_space<vmem>>, %arg3: memref<1x2xf32, #tpu.memory_space<vmem>>) attributes {dimension_semantics = [#tpu.dimension_semantics<parallel>], iteration_bounds = array<i64: 1>, scalar_prefetch = 0 : i64, scratch_operands = 0 : i64, tpu.core_type = #tpu.core_type<tc>, window_params = [{transform_indices = @transform_0, window_bounds = array<i64: 16, 32>}, {transform_indices = @transform_1, window_bounds = array<i64: 16, 1>}, {transform_indices = @transform_2, window_bounds = array<i64: 1, 2>}]} {
    %c0 = arith.constant 0 : index
    %c0_0 = arith.constant 0 : index
    %0 = vector.load %arg1[%c0, %c0_0] : memref<16x32xf32, #tpu.memory_space<vmem>>, vector<16x32xf32>
    %c0_1 = arith.constant 0 : index
    %c0_2 = arith.constant 0 : index
    %1 = vector.load %arg2[%c0_1, %c0_2] : memref<16x1xi32, #tpu.memory_space<vmem>>, vector<16x1xi32>
    %2 = tpu.iota {dimensions = array<i32: 1>} : vector<1x32xi32>
    %3 = vector.broadcast %2 : vector<1x32xi32> to vector<16x32xi32>
    %4 = vector.broadcast %1 : vector<16x1xi32> to vector<16x32xi32>
    %5 = arith.cmpi eq, %3, %4 : vector<16x32xi32>
    %cst = arith.constant -3.40282347E+38 : f32
    %6 = vector.broadcast %cst : f32 to vector<16x32xf32>
    %7 = arith.select %5, %0, %6 : vector<16x32xi1>, vector<16x32xf32>
    %cst_3 = arith.constant dense<0xFF800000> : vector<16xf32>
    %8 = vector.multi_reduction <maximumf>, %7, %cst_3 [1] : vector<16x32xf32> to vector<16xf32>
    %9 = vector.shape_cast %8 : vector<16xf32> to vector<16x1xf32>
    %10 = vector.broadcast %9 : vector<16x1xf32> to vector<16x32xf32>
    %11 = arith.cmpf ogt, %0, %10 : vector<16x32xf32>
    %12 = arith.extui %11 : vector<16x32xi1> to vector<16x32xi32>
    %13 = arith.sitofp %12 : vector<16x32xi32> to vector<16x32xf32>
    %cst_4 = arith.constant 1.000000e+00 : f32
    %14 = vector.broadcast %cst_4 : f32 to vector<32x1xf32>
    %cst_5 = arith.constant dense<0.000000e+00> : vector<16x1xf32>
    %15 = tpu.matmul %13, %14, %cst_5 {dimension_numbers = #tpu.dot_dimension_numbers<[1], [0], [0], [1], [0, 0, 1, 1], [], []>} : vector<16x32xf32>, vector<32x1xf32>, vector<16x1xf32> -> vector<16x1xf32>
    %c16_i32 = arith.constant 16 : i32
    %16 = arith.muli %arg0, %c16_i32 : i32
    %17 = tpu.iota {dimensions = array<i32: 0>} : vector<16x1xi32>
    %18 = vector.broadcast %16 : i32 to vector<16x1xi32>
    %19 = arith.addi %18, %17 : vector<16x1xi32>
    %c13_i32 = arith.constant 13 : i32
    %20 = vector.broadcast %c13_i32 : i32 to vector<16x1xi32>
    %21 = arith.cmpi slt, %19, %20 : vector<16x1xi32>
    %22 = arith.extui %21 : vector<16x1xi1> to vector<16x1xi32>
    %23 = arith.sitofp %22 : vector<16x1xi32> to vector<16x1xf32>
    %cst_6 = arith.constant 1.000000e+00 : f32
    %24 = vector.broadcast %cst_6 : f32 to vector<16x1xf32>
    %25 = arith.cmpf olt, %15, %24 : vector<16x1xf32>
    %26 = arith.extui %25 : vector<16x1xi1> to vector<16x1xi32>
    %27 = arith.sitofp %26 : vector<16x1xi32> to vector<16x1xf32>
    %28 = arith.mulf %27, %23 : vector<16x1xf32>
    %29 = vector.shape_cast %28 : vector<16x1xf32> to vector<1x16x1xf32>
    %cst_7 = arith.constant dense<0.000000e+00> : vector<1xf32>
    %30 = vector.multi_reduction <add>, %29, %cst_7 [1, 2] : vector<1x16x1xf32> to vector<1xf32>
    %31 = vector.shape_cast %30 : vector<1xf32> to vector<1x1x1xf32>
    %32 = vector.extract %31[0, 0, 0] : f32 from vector<1x1x1xf32>
    %cst_8 = arith.constant 5.000000e+00 : f32
    %33 = vector.broadcast %cst_8 : f32 to vector<16x1xf32>
    %34 = arith.cmpf olt, %15, %33 : vector<16x1xf32>
    %35 = arith.extui %34 : vector<16x1xi1> to vector<16x1xi32>
    %36 = arith.sitofp %35 : vector<16x1xi32> to vector<16x1xf32>
    %37 = arith.mulf %36, %23 : vector<16x1xf32>
    %38 = vector.shape_cast %37 : vector<16x1xf32> to vector<1x16x1xf32>
    %cst_9 = arith.constant dense<0.000000e+00> : vector<1xf32>
    %39 = vector.multi_reduction <add>, %38, %cst_9 [1, 2] : vector<1x16x1xf32> to vector<1xf32>
    %40 = vector.shape_cast %39 : vector<1xf32> to vector<1x1x1xf32>
    %41 = vector.extract %40[0, 0, 0] : f32 from vector<1x1x1xf32>
    %42 = vector.broadcast %32 : f32 to vector<1xf32>
    %43 = vector.broadcast %41 : f32 to vector<1xf32>
    %44 = tpu.concatenate %42, %43 in 0 : vector<1xf32>, vector<1xf32> -> vector<2xf32>
    %45 = vector.shape_cast %44 : vector<2xf32> to vector<1x2xf32>
    %c0_10 = arith.constant 0 : index
    %c0_11 = arith.constant 0 : index
    %46 = vector.load %arg3[%c0_10, %c0_11] : memref<1x2xf32, #tpu.memory_space<vmem>>, vector<1x2xf32>
    tpu.vector_store %arg3[%c0_10, %c0_11], %45 {strides = array<i32>} : memref<1x2xf32, #tpu.memory_space<vmem>>, vector<1x2xf32>,
    return
  }
  func.func @transform_0(%arg0: i32) -> (i32, i32) {
    %c0_i32 = arith.constant 0 : i32
    %c0_i32_0 = arith.constant 0 : i32
    return %arg0, %c0_i32 : i32, i32
  }
  func.func @transform_1(%arg0: i32) -> (i32, i32) {
    %c0_i32 = arith.constant 0 : i32
    %c0_i32_0 = arith.constant 0 : i32
    return %arg0, %c0_i32 : i32, i32
  }
  func.func @transform_2(%arg0: i32) -> (i32, i32) {
    %c0_i32 = arith.constant 0 : i32
    %c0_i32_0 = arith.constant 0 : i32
    return %arg0, %c0_i32 : i32, i32
  }
}

</mosaic_0001>

<bundles_post_ra>
// kernel: tpu_custom_call.1
= control target key start
LH: loop header
LB: loop body
LE: loop exit
PB: predicated region body
PF: predicated region fallthrough
CT: control target
= control target key end

     0   :  { %s312_s0 = inlined_call_operand.vmem [shape: f32[13,32], index: 0, kind: input, shape index: {}]   ;;  %s313_s1 = inlined_call_operand.vmem [shape: s32[13,1], index: 1, kind: input, shape index: {}]   ;;  %s314_s2 = inlined_call_operand.hbm [shape: f32[1,2], index: 2, kind: output, shape index: {}]  }
   0x1   :  { %v14_v0 = vld [vmem:[%s313_s1] sm:$0xff] }
   0x2   :  { %7 = vsyncpa [#allocation3], 0  ;;  %v262_v1 = vmov 0   ;;  %v15_v2 = vld [vmem:[%s313_s1 + $0x8] sm:$0xff]  ;;  %v263_v3 = vmov 1.0|1.0   ;;  %v16_v4 = vlaneseq }
   0x3   :  { %237 = vset.pattern.permute.xlu0 %v262_v1  ;;  %225 = vmatprep.subr.bf16.mxu0 %v263_v3  ;;  %v12_v6 = vld [vmem:[%s312_s0] sm:$0xff]  ;;  %vm28_vm0 = vcmask 261120   ;;  %v13_v10 = vld [vmem:[%s312_s0 + $0x8] sm:$0xff]  ;;  %v264_v15 = vmov 0.0   ;;  %vm143_vm8 = vcmask 7168   ;;  %s265_s0 = smov [#allocation2]  }
   0x4   :  { %19 = vperm.xlu0 %237, %v14_v0   ;;  %226 = vmatpush3.bf16.msra.mxu0 %v263_v3  ;;  %v17_v5 = vand.u32 127, %v16_v4  ;;  %v124_v19 = vshrl.u32 %v16_v4, 7  ;;  %s191_s16 = sshll.u32 %s265_s0, 4  ;;  %vm180_vm11 = vcmp.lt.s32.totalorder %v16_v4, 1  ;;  %vm183_vm12 = vcmask 8192   ;;  %s192_s16 = int_to_ptr.vmem [resolvable:$true] %s191_s16 }
   0x5   :  { %227 = vmatprep.subr.bf16.mxu0 %v263_v3  ;;  %s238_s19 = scalar_lea.vmem %s192_s16, 16  ;;  %s242_s20 = scalar_lea.vmem %s192_s16, 32 }
   0x6   :  { %v125_v20 = vadd.s32 8, %v124_v19  ;;  %p239_p0 = scmp.ne.s32.totalorder %s192_s16, %s238_s19  ;;  %p243_p1 = scmp.lt.s32.totalorder %s192_s16, %s192_s16 }
   0x7   :  { %p244_p2 = scmp.lt.s32.totalorder %s242_s20, %s238_s19 }
   0x8   :  { %22 = vperm.xlu0 %237, %v15_v2   ;;  %228 = vmatpush3.bf16.msra.mxu0 %v263_v3  ;;  %vm130_vm5 = vcmp.lt.s32.totalorder %v125_v20, 13 }
   0x9   :  { %v203_v22 = vsel %vm130_vm5, 1.0, %v264_v15  ;;  %p245_p3 = por %p244_p2, %p243_p1 }
   0xb   :  { %p246_p4 = pnand %p245_p3, %p239_p0 }
  0x83   :  { %v20_v7 = vpop.permute.xlu0 %19 }
  0x84   :  { %vm24_vm1 = vcmp.eq.s32.totalorder %v17_v5, %v20_v7 }
  0x85   :  { %v26_v8 = vsel %vm24_vm1, %v12_v6, -3.4028235e+38 }
  0x86   :  { %v29_v9 = vsel %vm28_vm0, %v26_v8, -inf }
  0x87   :  { %v23_v11 = vpop.permute.xlu0 %22  ;;  %30 = vmax.xlane.f32.xlu1 %v29_v9 }
  0x88   :  { %vm25_vm2 = vcmp.eq.s32.totalorder %v17_v5, %v23_v11 }
  0x89   :  { %v27_v12 = vsel %vm25_vm2, %v13_v10, -3.4028235e+38 }
  0x8a   :  { %v32_v13 = vsel %vm28_vm0, %v27_v12, -inf }
  0x8b   :  { %33 = vmax.xlane.f32.xlu1 %v32_v13 }
 0x114   :  { %v31_v14 = vpop.xlane.xlu1 %30 }
 0x115   :  { %vm35_vm3 = vcmp.gt.f32.partialorder %v12_v6, %v31_v14 }
 0x116   :  { %v199_v16 = vsel %vm35_vm3, 1.0, %v264_v15 }
 0x117   :  { %222 = vmatprep.mubr.msk.f32.mxu0 %vm28_vm0, %v199_v16 }
 0x118   :  { %v34_v17 = vpop.xlane.xlu1 %33 }
 0x119   :  { %vm36_vm4 = vcmp.gt.f32.partialorder %v13_v10, %v34_v17 }
 0x11a   :  { %v200_v18 = vsel %vm36_vm4, 1.0, %v264_v15 }
 0x11b   :  { %223 = vmatmul.mubr.msk.f32.vlgmr.msra.gmra.mrb[0].mxu0 %vm28_vm0, %v200_v18 }
 0x1ee   :  { %v224_v21 = vpop.f32.mrb[0].mxu0 }
 0x1ef   :  { %vm136_vm6 = vcmp.lt.f32.partialorder %v224_v21, 1.0  ;;  %vm157_vm7 = vcmp.lt.f32.partialorder %v224_v21, 5.0  ;;  %v113_v23 = vpop.f32.mrb[1].mxu0 }
 0x1f0   :  { %v205_v24 = vsel %vm136_vm6, 1.0, %v264_v15  ;;  %v207_v25 = vsel %vm157_vm7, 1.0, %v264_v15  ;;  %vm135_vm9 = vcmp.lt.f32.partialorder %v113_v23, 1.0  ;;  %vm156_vm10 = vcmp.lt.f32.partialorder %v113_v23, 5.0 }
 0x1f1   :  { %v142_v26 = vmul.f32 %v205_v24, %v203_v22  ;;  %v163_v27 = vmul.f32 %v207_v25, %v203_v22  ;;  %v204_v28 = vsel %vm135_vm9, 1.0, %v264_v15  ;;  %v206_v29 = vsel %vm156_vm10, 1.0, %v264_v15 }
 0x1f2   :  { %v164_v30 = vsel %vm143_vm8, %v206_v29, 0.0  ;;  %v144_v31 = vsel %vm143_vm8, %v204_v28, 0.0 }
 0x1f3   :  { %v165_v32 = vsel %vm143_vm8, %v163_v27, 0.0  ;;  %v145_v33 = vsel %vm143_vm8, %v142_v26, 0.0 }
 0x1f4   :  { %v166_v34 = vadd.f32 %v165_v32, %v164_v30  ;;  %v146_v35 = vadd.f32 %v145_v33, %v144_v31 }
 0x1f6   :  { %167 = vadd.xlane.f32.xlu1 %v166_v34  ;;  %147 = vadd.xlane.f32.xlu0 %v146_v35 }
 0x283   :  { %v168_v36 = vpop.xlane.xlu1 %167  ;;  %v148_v37 = vpop.xlane.xlu0 %147 }
 0x284   :  { %v169_v38 = vrot.slane %v168_v36, 4  ;;  %v149_v39 = vrot.slane %v148_v37, 4 }
 0x286   :  { %v170_v40 = vadd.f32 %v169_v38, %v168_v36  ;;  %v150_v41 = vadd.f32 %v149_v39, %v148_v37 }
 0x288   :  { %v171_v42 = vrot.slane %v170_v40, 2  ;;  %v151_v43 = vrot.slane %v150_v41, 2 }
 0x28a   :  { %v172_v44 = vadd.f32 %v171_v42, %v170_v40  ;;  %v152_v45 = vadd.f32 %v151_v43, %v150_v41 }
 0x28c   :  { %v153_v46 = vrot.slane %v152_v45, 1  ;;  %v173_v47 = vrot.slane %v172_v44, 1 }
 0x28e   :  { %v154_v48 = vadd.f32 %v153_v46, %v152_v45  ;;  %v174_v49 = vadd.f32 %v173_v47, %v172_v44 }
 0x290   :  { %229 = vpush %v154_v48 }
 0x291   :  { %231 = vpush %v174_v49 }
 0x2c1   :  { %s230_s17 = spop %229 }
 0x2c2   :  { %v176_v50 = vstv %s230_s17  ;;  %s232_s18 = spop %231 }
 0x2c3   :  { %v177_v51 = vstv %s232_s18 }
 0x2c4   :  { %v182_v52 = vsel %vm180_vm11, %v176_v50, %v177_v51 }
 0x2c5   :  { %184 = vst.msk [vmem:[#allocation2] sm:$0x1] %vm183_vm12, %v182_v52 }
 0x2c6   :  { %249 = shalt.err (!%p246_p4)
}
 0x2c7   :  { %s250_s23 = scalar_lea.hbm %s314_s2, 16 }
 0x2c8   :  { %p251_p5 = scmp.ne.s32.totalorder %s314_s2, %s250_s23  ;;  %p254_p6 = scmp.lt.u32.totalorder %s250_s23, %s314_s2 }
 0x2ca   :  { %p256_p7 = pnand %p254_p6, %p251_p5 }
 0x2cc   :  { %259 = shalt.err (!%p256_p7)
}
 0x2cd   :  { %194 = dma.vmem_to_hbm [thread:$0]  %s192_s16, 16, %s314_s2, [#allocation3]  }
 0x2ce   :  { %260 = dma.done.wait [#allocation3], 16  }
 0x2cf   :  { %261 = vsyncadd [#allocation3], 4294967280 }
 0x2d0   :  { %198 = vsyncpa [#allocation3], 1 }

</bundles_post_ra>
